<compile_context>
chip_gen: v7x
topology: tpu7x:2x2x1
jax: 0.10.0
libtpu: 0.0.40
codegen_flags: <defaults>
</compile_context>

<pallas_src>
import jax
import jax.numpy as jnp
import numpy as np
from jax.experimental import pallas as pl
from jax.experimental.pallas import tpu as pltpu

_LANE_WIDTH = 512  # lane-dense last dim (multiple of 128)


def _partial_sums_kernel(pred_ref, tgt_ref, out_ref):
    # d, |d|, d*d are pure VPU work; the axis-0 reduce is sublane-direction
    # only (vreg adds + one intra-vreg sublane reduce), no cross-lane reduce.
    d = pred_ref[...].astype(jnp.float32) - tgt_ref[...].astype(jnp.float32)
    abs_p = jnp.sum(jnp.abs(d), axis=0, keepdims=True)   # (1, W)
    sq_p = jnp.sum(d * d, axis=0, keepdims=True)         # (1, W)
    out_ref[:, 0:1, :] = abs_p[:, None, :]
    out_ref[:, 1:2, :] = sq_p[:, None, :]


def _choose_tile_m(num_rows, lane_width, target_f32_bytes=4 << 20):
    # ~4 MiB of f32 work per input buffer: large enough to amortize per-step
    # overhead (~85%+ of HBM roofline), small enough that double-buffered
    # inputs + elementwise intermediates stay far below v7x's 64 MiB VMEM.
    rows = max(8, target_f32_bytes // (lane_width * 4))
    rows = min(rows, max(num_rows, 8))
    rows = max(8, (rows // 8) * 8)
    return int(rows)


def combined_loss(pred, target, mae_weight=0.5, mse_weight=0.5):
    assert pred.shape == target.shape, "pred/target must have the same shape"
    total = pred.size
    W = _LANE_WIDTH

    # Flatten; keep the original dtype in HBM (cast happens in-kernel).
    p = pred.reshape(-1)
    t = target.reshape(-1)

    rows = pl.cdiv(total, W)
    tile_m = _choose_tile_m(rows, W)
    num_blocks = pl.cdiv(rows, tile_m)
    padded_rows = num_blocks * tile_m
    pad = padded_rows * W - total
    if pad:
        # Zero-pad both operands -> padded elements contribute 0 to both sums.
        p = jnp.pad(p, (0, pad))
        t = jnp.pad(t, (0, pad))
    p2 = p.reshape(padded_rows, W)
    t2 = t.reshape(padded_rows, W)

    itemsize = jnp.dtype(p2.dtype).itemsize
    tile_in_bytes = tile_m * W * itemsize
    tile_f32_bytes = tile_m * W * 4
    # 2 inputs x 2 pipeline buffers + room for f32 elementwise intermediates.
    vmem_limit = int(4 * tile_in_bytes + 4 * tile_f32_bytes + (4 << 20))
    vmem_limit = max(16 << 20, min(vmem_limit, 48 << 20))

    partials = pl.pallas_call(
        _partial_sums_kernel,
        out_shape=jax.ShapeDtypeStruct((num_blocks, 2, W), jnp.float32),
        grid_spec=pltpu.PrefetchScalarGridSpec(
            num_scalar_prefetch=0,
            grid=(num_blocks,),
            in_specs=[
                pl.BlockSpec((tile_m, W), lambda i: (i, 0)),
                pl.BlockSpec((tile_m, W), lambda i: (i, 0)),
            ],
            out_specs=pl.BlockSpec((1, 2, W), lambda i: (i, 0, 0)),
        ),
        compiler_params=pltpu.CompilerParams(
            dimension_semantics=("parallel",),
            vmem_limit_bytes=vmem_limit,
        ),
    )(p2, t2)

    # Tiny final reduce + weighting in the wrapper (num_blocks x 2 x W floats).
    sums = jnp.sum(partials, axis=(0, 2))  # [sum |d|, sum d^2]
    inv_n = jnp.float32(1.0 / float(total))
    return (jnp.float32(mae_weight) * sums[0]
            + jnp.float32(mse_weight) * sums[1]) * inv_n


if __name__ == "__main__":
    key = jax.random.PRNGKey(0)
    k1, k2, k3, k4 = jax.random.split(key, 4)

    # Small regression-style shapes (predictions vs targets).
    pred = jax.random.normal(k1, (16, 256), dtype=jnp.float32)
    target = jax.random.normal(k2, (16, 256), dtype=jnp.float32)

    loss = combined_loss(pred, target, mae_weight=0.5, mse_weight=0.5)
    loss = jax.block_until_ready(loss)

    # Reference (mirrors nn.L1Loss / nn.MSELoss mean reduction).
    d = pred - target
    ref = 0.5 * jnp.mean(jnp.abs(d)) + 0.5 * jnp.mean(d * d)
    np.testing.assert_allclose(np.asarray(loss), np.asarray(ref), rtol=1e-5, atol=1e-6)

    # Ragged / low-precision case: exercises zero-padding and in-kernel bf16->f32 cast.
    pred_b = jax.random.normal(k3, (5, 300), dtype=jnp.bfloat16)
    target_b = jax.random.normal(k4, (5, 300), dtype=jnp.bfloat16)
    loss_b = jax.block_until_ready(combined_loss(pred_b, target_b))
    db = pred_b.astype(jnp.float32) - target_b.astype(jnp.float32)
    ref_b = 0.5 * jnp.mean(jnp.abs(db)) + 0.5 * jnp.mean(db * db)
    np.testing.assert_allclose(np.asarray(loss_b), np.asarray(ref_b), rtol=1e-5, atol=1e-6)

    print("KERNEL_OK")
</pallas_src>

<mosaic_0001>
module attributes {stable_mosaic.version = 11 : i64} {
  func.func @_partial_sums_kernel(%arg0: i32, %arg1: memref<8x512xf32, #tpu.memory_space<vmem>>, %arg2: memref<8x512xf32, #tpu.memory_space<vmem>>, %arg3: memref<1x2x512xf32, #tpu.memory_space<vmem>>) attributes {dimension_semantics = [#tpu.dimension_semantics<parallel>], iteration_bounds = array<i64: 1>, scalar_prefetch = 0 : i64, scratch_operands = 0 : i64, tpu.core_type = #tpu.core_type<tc>, window_params = [{transform_indices = @transform_0, window_bounds = array<i64: 8, 512>}, {transform_indices = @transform_1, window_bounds = array<i64: 8, 512>}, {transform_indices = @transform_2, window_bounds = array<i64: 1, 2, 512>}]} {
    %c0 = arith.constant 0 : index
    %c0_0 = arith.constant 0 : index
    %0 = vector.load %arg1[%c0, %c0_0] : memref<8x512xf32, #tpu.memory_space<vmem>>, vector<8x512xf32>
    %c0_1 = arith.constant 0 : index
    %c0_2 = arith.constant 0 : index
    %1 = vector.load %arg2[%c0_1, %c0_2] : memref<8x512xf32, #tpu.memory_space<vmem>>, vector<8x512xf32>
    %2 = arith.subf %0, %1 : vector<8x512xf32>
    %3 = math.absf %2 : vector<8x512xf32>
    %cst = arith.constant dense<0.000000e+00> : vector<512xf32>
    %4 = vector.multi_reduction <add>, %3, %cst [0] : vector<8x512xf32> to vector<512xf32>
    %5 = vector.shape_cast %4 : vector<512xf32> to vector<1x512xf32>
    %6 = arith.mulf %2, %2 : vector<8x512xf32>
    %cst_3 = arith.constant dense<0.000000e+00> : vector<512xf32>
    %7 = vector.multi_reduction <add>, %6, %cst_3 [0] : vector<8x512xf32> to vector<512xf32>
    %8 = vector.shape_cast %7 : vector<512xf32> to vector<1x512xf32>
    %9 = vector.shape_cast %5 : vector<1x512xf32> to vector<1x1x512xf32>
    %c0_4 = arith.constant 0 : index
    %c0_5 = arith.constant 0 : index
    %c0_6 = arith.constant 0 : index
    %10 = vector.load %arg3[%c0_4, %c0_5, %c0_6] : memref<1x2x512xf32, #tpu.memory_space<vmem>>, vector<1x1x512xf32>
    tpu.vector_store %arg3[%c0_4, %c0_5, %c0_6], %9 {strides = array<i32>} : memref<1x2x512xf32, #tpu.memory_space<vmem>>, vector<1x1x512xf32>,
    %11 = vector.shape_cast %8 : vector<1x512xf32> to vector<1x1x512xf32>
    %c0_7 = arith.constant 0 : index
    %c1 = arith.constant 1 : index
    %c0_8 = arith.constant 0 : index
    %12 = vector.load %arg3[%c0_7, %c1, %c0_8] : memref<1x2x512xf32, #tpu.memory_space<vmem>>, vector<1x1x512xf32>
    tpu.vector_store %arg3[%c0_7, %c1, %c0_8], %11 {strides = array<i32>} : memref<1x2x512xf32, #tpu.memory_space<vmem>>, vector<1x1x512xf32>,
    return
  }
  func.func @transform_0(%arg0: i32) -> (i32, i32) {
    %c0_i32 = arith.constant 0 : i32
    %c0_i32_0 = arith.constant 0 : i32
    return %arg0, %c0_i32 : i32, i32
  }
  func.func @transform_1(%arg0: i32) -> (i32, i32) {
    %c0_i32 = arith.constant 0 : i32
    %c0_i32_0 = arith.constant 0 : i32
    return %arg0, %c0_i32 : i32, i32
  }
  func.func @transform_2(%arg0: i32) -> (i32, i32, i32) {
    %c0_i32 = arith.constant 0 : i32
    %c0_i32_0 = arith.constant 0 : i32
    %c0_i32_1 = arith.constant 0 : i32
    return %arg0, %c0_i32, %c0_i32_0 : i32, i32, i32
  }
}

</mosaic_0001>

<bundles_post_ra>
// kernel: tpu_custom_call.1
= control target key start
LH: loop header
LB: loop body
LE: loop exit
PB: predicated region body
PF: predicated region fallthrough
CT: control target
= control target key end

     0   :  { %7 = vsyncpa [#allocation3], 0  ;;  %s326_s0 = inlined_call_operand.hbm [shape: f32[8,512], index: 0, kind: input, shape index: {}]   ;;  %s327_s1 = inlined_call_operand.hbm [shape: f32[8,512], index: 1, kind: input, shape index: {}]   ;;  %s328_s2 = inlined_call_operand.hbm [shape: f32[1,2,512], index: 2, kind: output, shape index: {}]  }
   0x1   :  { %8 = vsyncpa [#allocation6], 0 }
   0x2   :  { %9 = vsyncpa [#allocation4], 0  ;;  %s261_s9 = smov [#allocation2]   ;;  %s262_s11 = smov [#allocation5]  }
   0x3   :  { %s16_s10 = sshll.u32 %s261_s9, 4  ;;  %s26_s12 = sshll.u32 %s262_s11, 4  ;;  %s17_s10 = int_to_ptr.vmem [resolvable:$true] %s16_s10  ;;  %s27_s12 = int_to_ptr.vmem [resolvable:$true] %s26_s12 }
   0x4   :  { %s189_s15 = scalar_lea.hbm %s326_s0, 512 }
   0x5   :  { %p190_p0 = scmp.ne.s32.totalorder %s326_s0, %s189_s15  ;;  %p193_p1 = scmp.lt.u32.totalorder %s189_s15, %s326_s0 }
   0x7   :  { %p195_p2 = pnand %p193_p1, %p190_p0 }
   0x9   :  { %198 = shalt.err (!%p195_p2)
}
   0xa   :  { %s199_s20 = scalar_lea.vmem %s17_s10, 512  ;;  %p204_p4 = scmp.lt.s32.totalorder %s17_s10, %s17_s10 }
   0xb   :  { %p200_p3 = scmp.ne.s32.totalorder %s17_s10, %s199_s20  ;;  %p205_p5 = scmp.lt.s32.totalorder %s199_s20, %s199_s20 }
   0xd   :  { %p206_p6 = por %p205_p5, %p204_p4 }
   0xf   :  { %p207_p7 = pnand %p206_p6, %p200_p3 }
  0x11   :  { %210 = shalt.err (!%p207_p7)
}
  0x12   :  { %19 = dma.hbm_to_vmem [thread:$0]  %s326_s0, 512, %s17_s10, [#allocation3]  }
  0x13   :  { %s211_s25 = scalar_lea.hbm %s327_s1, 512 }
  0x14   :  { %p212_p8 = scmp.ne.s32.totalorder %s327_s1, %s211_s25  ;;  %p215_p9 = scmp.lt.u32.totalorder %s211_s25, %s327_s1 }
  0x16   :  { %p217_p10 = pnand %p215_p9, %p212_p8 }
  0x18   :  { %220 = shalt.err (!%p217_p10)
}
  0x19   :  { %s221_s30 = scalar_lea.vmem %s27_s12, 512  ;;  %p226_p12 = scmp.lt.s32.totalorder %s27_s12, %s27_s12 }
  0x1a   :  { %p222_p11 = scmp.ne.s32.totalorder %s27_s12, %s221_s30  ;;  %p227_p13 = scmp.lt.s32.totalorder %s221_s30, %s221_s30 }
  0x1c   :  { %p228_p0 = por %p227_p13, %p226_p12 }
  0x1e   :  { %p229_p1 = pnand %p228_p0, %p222_p11 }
  0x20   :  { %232 = shalt.err (!%p229_p1)
}
  0x21   :  { %29 = dma.hbm_to_vmem [thread:$0]  %s327_s1, 512, %s27_s12, [#allocation6]  }
  0x22   :  { %255 = dma.done.wait [#allocation3], 512  }
  0x23   :  { %256 = vsyncadd [#allocation3], 4294966784 }
  0x24   :  { %257 = dma.done.wait [#allocation6], 512  }
  0x25   :  { %258 = vsyncadd [#allocation6], 4294966784  ;;  %v263_v0 = vmov 1966171168   ;;  %v113_v2 = vlaneseq  ;;  %v36_v5 = vld [vmem:[#allocation2] sm:$0xff]  ;;  %v37_v6 = vld [vmem:[#allocation2 + $0x8] sm:$0xff] }
  0x26   :  { %v111_v1 = vunpack.c.l.s4 %v263_v0  ;;  %v38_v7 = vld [vmem:[#allocation2 + $0x10] sm:$0xff]  ;;  %v39_v8 = vld [vmem:[#allocation2 + $0x18] sm:$0xff]  ;;  %v40_v9 = vld [vmem:[#allocation5] sm:$0xff]  ;;  %s264_s1 = smov [#allocation7]  }
  0x27   :  { %v114_v4 = vshrl.u32 %v113_v2, 7  ;;  %v41_v10 = vld [vmem:[#allocation5 + $0x8] sm:$0xff]  ;;  %v42_v11 = vld [vmem:[#allocation5 + $0x10] sm:$0xff]  ;;  %v43_v12 = vld [vmem:[#allocation5 + $0x18] sm:$0xff]  ;;  %v44_v13 = vsub.f32 %v36_v5, %v40_v9  ;;  %s175_s4 = sshll.u32 %s264_s1, 4  ;;  %vm135_vm0 = vcmp.lt.s32.totalorder %v113_v2, 512  ;;  %s176_s4 = int_to_ptr.vmem [resolvable:$true] %s175_s4 }
  0x28   :  { %v112_v3 = vunpack.c.0.s8 %v111_v1  ;;  %v45_v14 = vsub.f32 %v37_v6, %v41_v10  ;;  %v46_v15 = vsub.f32 %v38_v7, %v42_v11  ;;  %v47_v16 = vsub.f32 %v39_v8, %v43_v12  ;;  %s233_s5 = scalar_lea.vmem %s176_s4, 128  ;;  %p238_p3 = scmp.lt.s32.totalorder %s176_s4, %s176_s4 }
  0x29   :  { %v48_v18 = vand.u32 2147483647, %v44_v13  ;;  %v76_v20 = vmul.f32 %v44_v13, %v44_v13  ;;  %p234_p2 = scmp.ne.s32.totalorder %s176_s4, %s233_s5  ;;  %p239_p4 = scmp.lt.s32.totalorder %s233_s5, %s233_s5 }
  0x2a   :  { %v305_v17 = vsub.s32 %v112_v3, %v114_v4  ;;  %v49_v19 = vand.u32 2147483647, %v45_v14  ;;  %v77_v21 = vmul.f32 %v45_v14, %v45_v14  ;;  %v50_v22 = vand.u32 2147483647, %v46_v15 }
  0x2b   :  { %v51_v23 = vand.u32 2147483647, %v47_v16  ;;  %v78_v24 = vmul.f32 %v46_v15, %v46_v15  ;;  %v79_v25 = vmul.f32 %v47_v16, %v47_v16  ;;  %v52_v26 = vrot.slane %v48_v18, 4  ;;  %p240_p5 = por %p239_p4, %p238_p3 }
  0x2c   :  { %v58_v27 = vrot.slane %v49_v19, 4  ;;  %v80_v28 = vrot.slane %v76_v20, 4  ;;  %v86_v29 = vrot.slane %v77_v21, 4  ;;  %v64_v30 = vrot.slane %v50_v22, 4 }
  0x2d   :  { %v70_v31 = vrot.slane %v51_v23, 4  ;;  %v92_v32 = vrot.slane %v78_v24, 4  ;;  %v98_v33 = vrot.slane %v79_v25, 4  ;;  %v53_v34 = vadd.f32 %v52_v26, %v48_v18  ;;  %p241_p6 = pnand %p240_p5, %p234_p2 }
  0x2e   :  { %v59_v35 = vadd.f32 %v58_v27, %v49_v19  ;;  %v81_v36 = vadd.f32 %v80_v28, %v76_v20  ;;  %v87_v37 = vadd.f32 %v86_v29, %v77_v21  ;;  %v65_v38 = vadd.f32 %v64_v30, %v50_v22 }
  0x2f   :  { %v71_v39 = vadd.f32 %v70_v31, %v51_v23  ;;  %v93_v40 = vadd.f32 %v92_v32, %v78_v24  ;;  %v99_v41 = vadd.f32 %v98_v33, %v79_v25  ;;  %v54_v42 = vrot.slane %v53_v34, 2 }
  0x30   :  { %v60_v43 = vrot.slane %v59_v35, 2  ;;  %v82_v44 = vrot.slane %v81_v36, 2  ;;  %v88_v45 = vrot.slane %v87_v37, 2  ;;  %v66_v46 = vrot.slane %v65_v38, 2 }
  0x31   :  { %v72_v47 = vrot.slane %v71_v39, 2  ;;  %v94_v48 = vrot.slane %v93_v40, 2  ;;  %v100_v49 = vrot.slane %v99_v41, 2  ;;  %v55_v50 = vadd.f32 %v54_v42, %v53_v34 }
  0x32   :  { %v61_v51 = vadd.f32 %v60_v43, %v59_v35  ;;  %v83_v52 = vadd.f32 %v82_v44, %v81_v36  ;;  %v89_v53 = vadd.f32 %v88_v45, %v87_v37  ;;  %v67_v54 = vadd.f32 %v66_v46, %v65_v38 }
  0x33   :  { %v73_v55 = vadd.f32 %v72_v47, %v71_v39  ;;  %v95_v56 = vadd.f32 %v94_v48, %v93_v40  ;;  %v101_v57 = vadd.f32 %v100_v49, %v99_v41  ;;  %v56_v58 = vrot.slane %v55_v50, 1 }
  0x34   :  { %v62_v59 = vrot.slane %v61_v51, 1  ;;  %v84_v60 = vrot.slane %v83_v52, 1  ;;  %v90_v61 = vrot.slane %v89_v53, 1  ;;  %v68_v62 = vrot.slane %v67_v54, 1 }
  0x35   :  { %v74_v63 = vrot.slane %v73_v55, 1  ;;  %v96_v0 = vrot.slane %v95_v56, 1  ;;  %v102_v1 = vrot.slane %v101_v57, 1  ;;  %v57_v3 = vadd.f32 %v56_v58, %v55_v50 }
  0x36   :  { %v63_v4 = vadd.f32 %v62_v59, %v61_v51  ;;  %v85_v5 = vadd.f32 %v84_v60, %v83_v52  ;;  %v91_v6 = vadd.f32 %v90_v61, %v89_v53  ;;  %v69_v7 = vadd.f32 %v68_v62, %v67_v54 }
  0x37   :  { %v75_v8 = vadd.f32 %v74_v63, %v73_v55  ;;  %v97_v9 = vadd.f32 %v96_v0, %v95_v56  ;;  %v103_v10 = vadd.f32 %v102_v1, %v101_v57 }
  0x38   :  { %v108_v11 = vcombine.low %v57_v3, %v63_v4  ;;  %v142_v12 = vcombine.low %v85_v5, %v91_v6 }
  0x39   :  { %v109_v13 = vcombine.low %v69_v7, %v75_v8  ;;  %v143_v14 = vcombine.low %v97_v9, %v103_v10 }
  0x3a   :  { %v116_v15 = vrot.slane %v108_v11, %v305_v17  ;;  %v150_v16 = vrot.slane %v142_v12, %v305_v17 }
  0x3b   :  { %v123_v18 = vrot.slane %v109_v13, %v305_v17  ;;  %v157_v19 = vrot.slane %v143_v14, %v305_v17 }
  0x3d   :  { %v124_v20 = vcombine.low %v116_v15, %v123_v18  ;;  %v158_v21 = vcombine.low %v150_v16, %v157_v19 }
  0x3f   :  { %v131_v22 = vrot.slane %v124_v20, %v305_v17  ;;  %v165_v23 = vrot.slane %v158_v21, %v305_v17 }
  0x41   :  { %137 = vst.msk [vmem:[#allocation7] ss:$2 sm:$0xf] %vm135_vm0, %v131_v22  ;;  %168 = vst.msk [vmem:[#allocation7 + $0x1] ss:$2 sm:$0xf] %vm135_vm0, %v165_v23 }
  0x42   :  { %244 = shalt.err (!%p241_p6)
}
  0x43   :  { %s245_s8 = scalar_lea.hbm %s328_s2, 128 }
  0x44   :  { %p246_p7 = scmp.ne.s32.totalorder %s328_s2, %s245_s8  ;;  %p249_p8 = scmp.lt.u32.totalorder %s245_s8, %s328_s2 }
  0x46   :  { %p251_p9 = pnand %p249_p8, %p246_p7 }
  0x48   :  { %254 = shalt.err (!%p251_p9)
}
  0x49   :  { %178 = dma.vmem_to_hbm [thread:$0]  %s176_s4, 128, %s328_s2, [#allocation4]  }
  0x4a   :  { %259 = dma.done.wait [#allocation4], 128  }
  0x4b   :  { %260 = vsyncadd [#allocation4], 4294967168 }
  0x4c   :  { %182 = vsyncpa [#allocation3], 1 }
  0x4d   :  { %183 = vsyncpa [#allocation6], 1 }
  0x4e   :  { %184 = vsyncpa [#allocation4], 1 }

</bundles_post_ra>
